<compile_context>
chip_gen: v7x
topology: tpu7x:2x2x1
jax: 0.10.0
libtpu: 0.0.40
codegen_flags: <defaults>
</compile_context>

<pallas_src>
import jax
import jax.numpy as jnp
from jax.experimental import pallas as pl
from jax.experimental.pallas import tpu as pltpu


def _plan_argmax_kernel(logits_ref, actions_ref):
    """Argmax over the action (sublane) axis for ALL plan steps at once.

    logits_ref  : VMEM f32[num_actions, max_steps]  (steps lane-dense)
    actions_ref : VMEM i32[1, max_steps]            (argmax action per step)
    """
    logits = logits_ref[...]                                        # (A, S)
    num_actions = logits.shape[0]
    act_idx = jax.lax.broadcasted_iota(jnp.int32, logits.shape, 0)  # action id
    col_max = jnp.max(logits, axis=0, keepdims=True)                # (1, S)
    # Smallest action index attaining the per-step max (matches jnp.argmax
    # tie-breaking).  Sentinel `num_actions` can never win for non-NaN input.
    # (Kept as max + where + min: both reductions hit the XLU but this form is
    # guaranteed to lower; a single variadic argmax reduce is an option if the
    # plan ever grows large enough for it to matter.)
    cand = jnp.where(logits >= col_max, act_idx, jnp.int32(num_actions))
    actions_ref[...] = jnp.min(cand, axis=0, keepdims=True)         # i32(1,S)


@jax.jit
def compute_plan_actions(plan_logits):
    """Single Pallas call: per-step argmax actions for the whole plan.

    plan_logits: f32[max_steps, num_actions]  ->  i32[max_steps]
    """
    s, _ = plan_logits.shape
    # Layout plumbing only: transpose so plan steps map to the lane axis and
    # the kernel's output store is lane-dense.  No padding, no extra buffers.
    logits_t = plan_logits.astype(jnp.float32).T                    # (A, S)
    actions = pl.pallas_call(
        _plan_argmax_kernel,
        out_shape=jax.ShapeDtypeStruct((1, s), jnp.int32),
        in_specs=[pl.BlockSpec(memory_space=pltpu.MemorySpace.VMEM)],
        out_specs=pl.BlockSpec(memory_space=pltpu.MemorySpace.VMEM),
    )(logits_t)
    return actions.reshape(s)


class SyntheticBot:
    """Deterministic stand-in for the external bot: holds a fixed plan."""

    def __init__(self, env):
        self.env = env
        key = jax.random.PRNGKey(0)
        self.plan_logits = jax.random.normal(
            key, (env["max_steps"], env["num_actions"]), dtype=jnp.float32
        )
        # One kernel launch per reset(); the whole-episode action table is
        # pulled to the host with a SINGLE bulk D2H transfer, so replan()
        # never touches the device again.
        self.plan_actions = compute_plan_actions(self.plan_logits)
        self._actions_host = jax.device_get(self.plan_actions).tolist()
        self.step = 0

    def replan(self):
        # TODO(synk): the real bot would re-plan past its horizon; we clamp.
        idx = min(self.step, len(self._actions_host) - 1)
        action = self._actions_host[idx]
        self.step += 1
        return action


class Policy:
    """Wrapper around the bot so it uses the expected policy interface."""

    def __init__(self, bot_class, env):
        self.bot_class = bot_class
        self.env = env
        self.reset()

    def forward(self, _):
        """Ignore the current state passed in; return the bot's next action."""
        return self.bot.replan()

    __call__ = forward

    def reset(self):
        """When we reset the environment, we also have to reset the bot."""
        self.bot = self.bot_class(self.env)


if __name__ == "__main__":
    env = {"max_steps": 8, "num_actions": 7}

    # Observation in NCHW, consistent with a conv-style policy input; it is
    # ignored by forward(), exactly like the PyTorch reference.
    key = jax.random.PRNGKey(0)
    x = jax.random.normal(key, (2, 4, 16, 16), dtype=jnp.float32)

    policy = Policy(SyntheticBot, env)
    jax.block_until_ready(policy.bot.plan_actions)  # kernel ran at reset()

    # Pure-JAX reference: per-row argmax of the plan logits.
    expected = jax.device_get(
        jnp.argmax(policy.bot.plan_logits, axis=-1)
    ).tolist()

    a0 = policy(x)   # step 0
    a1 = policy(x)   # step 1 (bot's internal step advanced)
    assert a0 == expected[0], (a0, expected[0])
    assert a1 == expected[1], (a1, expected[1])

    # Full-plan check against the reference.
    assert policy.bot._actions_host == expected, (
        policy.bot._actions_host, expected)

    print("KERNEL_OK")
</pallas_src>

<mosaic_0001>
module attributes {stable_mosaic.version = 11 : i64} {
  func.func @_plan_argmax_kernel(%arg0: memref<7x8xf32, #tpu.memory_space<vmem>>, %arg1: memref<1x8xi32, #tpu.memory_space<vmem>>) attributes {dimension_semantics = [], scalar_prefetch = 0 : i64, scratch_operands = 0 : i64, tpu.core_type = #tpu.core_type<tc>} {
    %c0 = arith.constant 0 : index
    %c0_0 = arith.constant 0 : index
    %0 = vector.load %arg0[%c0, %c0_0] : memref<7x8xf32, #tpu.memory_space<vmem>>, vector<7x8xf32>
    %1 = tpu.iota {dimensions = array<i32: 0>} : vector<7x8xi32>
    %cst = arith.constant dense<0xFF800000> : vector<8xf32>
    %2 = vector.multi_reduction <maximumf>, %0, %cst [0] : vector<7x8xf32> to vector<8xf32>
    %3 = vector.shape_cast %2 : vector<8xf32> to vector<1x8xf32>
    %4 = vector.broadcast %3 : vector<1x8xf32> to vector<7x8xf32>
    %5 = arith.cmpf oge, %0, %4 : vector<7x8xf32>
    %c7_i32 = arith.constant 7 : i32
    %6 = vector.broadcast %c7_i32 : i32 to vector<7x8xi32>
    %7 = arith.select %5, %1, %6 : vector<7x8xi1>, vector<7x8xi32>
    %cst_1 = arith.constant dense<2147483647> : vector<8xi32>
    %8 = vector.multi_reduction <minsi>, %7, %cst_1 [0] : vector<7x8xi32> to vector<8xi32>
    %9 = vector.shape_cast %8 : vector<8xi32> to vector<1x8xi32>
    %c0_2 = arith.constant 0 : index
    %c0_3 = arith.constant 0 : index
    %10 = vector.load %arg1[%c0_2, %c0_3] : memref<1x8xi32, #tpu.memory_space<vmem>>, vector<1x8xi32>
    tpu.vector_store %arg1[%c0_2, %c0_3], %9 {strides = array<i32>} : memref<1x8xi32, #tpu.memory_space<vmem>>, vector<1x8xi32>,
    return
  }
}

</mosaic_0001>

<bundles_post_ra>
// kernel: compute_plan_actions.1
= control target key start
LH: loop header
LB: loop body
LE: loop exit
PB: predicated region body
PF: predicated region fallthrough
CT: control target
= control target key end

     0   :  { %vm12_vm0 = vcmask 63488   ;;  %s99_s0 = inlined_call_operand.vmem [shape: f32[7,8], index: 0, kind: input, shape index: {}]   ;;  %s100_s1 = inlined_call_operand.hbm [shape: s32[1,8], index: 1, kind: output, shape index: {}]  }
   0x1   :  { %v9_v0 = vld [vmem:[%s99_s0] sm:$0x7f] }
   0x2   :  { %6 = vsyncpa [#allocation3], 0  ;;  %v13_v1 = vsel %vm12_vm0, %v9_v0, -inf  ;;  %v10_v5 = vlaneseq  ;;  %s73_s0 = smov [#allocation2]   ;;  %vm32_vm4 = vcmask 57344  }
   0x3   :  { %v14_v2 = vrot.slane %v13_v1, 4  ;;  %s40_s8 = sshll.u32 %s73_s0, 4  ;;  %s41_s8 = int_to_ptr.vmem [resolvable:$true] %s40_s8 }
   0x4   :  { %v11_v8 = vshrl.u32 %v10_v5, 7  ;;  %s49_s9 = scalar_lea.vmem %s41_s8, 16  ;;  %s53_s10 = scalar_lea.vmem %s41_s8, 32 }
   0x5   :  { %v15_v3 = vmax.f32 %v13_v1, %v14_v2  ;;  %p50_p0 = scmp.ne.s32.totalorder %s41_s8, %s49_s9  ;;  %p54_p1 = scmp.lt.s32.totalorder %s41_s8, %s41_s8 }
   0x6   :  { %p55_p2 = scmp.lt.s32.totalorder %s53_s10, %s49_s9 }
   0x7   :  { %v16_v4 = vrot.slane %v15_v3, 2 }
   0x8   :  { %p56_p3 = por %p55_p2, %p54_p1 }
   0x9   :  { %v17_v6 = vmax.f32 %v15_v3, %v16_v4 }
   0xa   :  { %p57_p4 = pnand %p56_p3, %p50_p0 }
   0xb   :  { %v18_v7 = vrot.slane %v17_v6, 1 }
   0xd   :  { %v19_v9 = vmax.f32 %v17_v6, %v18_v7 }
   0xf   :  { %vm20_vm1 = vcmp.ge.f32.partialorder %v9_v0, %v19_v9 }
  0x10   :  { %v21_v10 = vsel %vm20_vm1, %v11_v8, 7 }
  0x11   :  { %v22_v11 = vsel %vm12_vm0, %v21_v10, 2147483647 }
  0x12   :  { %v23_v12 = vrot.slane %v22_v11, 4 }
  0x14   :  { %vm24_vm2 = vcmp.lt.s32.totalorder %v22_v11, %v23_v12 }
  0x15   :  { %v25_v13 = vsel %vm24_vm2, %v22_v11, %v23_v12 }
  0x16   :  { %v26_v14 = vrot.slane %v25_v13, 2 }
  0x18   :  { %vm27_vm3 = vcmp.lt.s32.totalorder %v25_v13, %v26_v14 }
  0x19   :  { %v28_v15 = vsel %vm27_vm3, %v25_v13, %v26_v14 }
  0x1a   :  { %v29_v16 = vrot.slane %v28_v15, 1 }
  0x1c   :  { %vm30_vm5 = vcmp.lt.s32.totalorder %v28_v15, %v29_v16 }
  0x1d   :  { %v31_v17 = vsel %vm30_vm5, %v28_v15, %v29_v16 }
  0x1e   :  { %33 = vst.msk [vmem:[#allocation2] sm:$0x1] %vm32_vm4, %v31_v17 }
  0x1f   :  { %60 = shalt.err (!%p57_p4)
}
  0x20   :  { %s61_s13 = scalar_lea.hbm %s100_s1, 16 }
  0x21   :  { %p62_p5 = scmp.ne.s32.totalorder %s100_s1, %s61_s13  ;;  %p65_p6 = scmp.lt.u32.totalorder %s61_s13, %s100_s1 }
  0x23   :  { %p67_p7 = pnand %p65_p6, %p62_p5 }
  0x25   :  { %70 = shalt.err (!%p67_p7)
}
  0x26   :  { %43 = dma.vmem_to_hbm [thread:$0]  %s41_s8, 16, %s100_s1, [#allocation3]  }
  0x27   :  { %71 = dma.done.wait [#allocation3], 16  }
  0x28   :  { %72 = vsyncadd [#allocation3], 4294967280 }
  0x29   :  { %47 = vsyncpa [#allocation3], 1 }

</bundles_post_ra>
